<compile_context>
chip_gen: v5e
topology: v5e:2x2
jax: 0.10.0
libtpu: 0.0.40
codegen_flags: <defaults>
</compile_context>

<pallas_src>
import functools

import jax
import jax.numpy as jnp
from jax.experimental import pallas as pl
from jax.experimental.pallas import tpu as pltpu


def _round_up(x: int, m: int) -> int:
    return (x + m - 1) // m * m


def _cdiv(a: int, b: int) -> int:
    return (a + b - 1) // b


def _vmem_limit_bytes() -> int:
    """Scoped VMEM request: ~7/8 of physical, capped at 112 MiB.

    v7x (64 MiB/TC) -> 56 MiB; v5e/v6e (128 MiB) -> 112 MiB.  Falls back to the
    conservative v7x figure if the TPU info query is unavailable.
    """
    cap = 64 * 1024 * 1024
    try:
        cap = int(pltpu.get_tpu_info().vmem_capacity_bytes)
    except Exception:
        pass
    return int(min(cap - cap // 8, 112 * 1024 * 1024))


def _row_tile_cap(in_features: int, n_padded: int, vmem_limit: int) -> int:
    """Largest row tile s.t. resident weight/bias + double-buffered x/out fit."""
    k_lane = _round_up(in_features, 128)                 # lane padding of x block
    weight = _round_up(in_features, 16) * n_padded * 2   # bf16, single-buffered
    bias = 8 * n_padded * 4
    per_row = 2 * k_lane * 4 + 2 * n_padded * 4          # 2x f32 x-tiles + 2x f32 out-tiles
    slack = 4 * 1024 * 1024                              # compiler scratch / acc headroom
    avail = vmem_limit - weight - bias - slack
    cap = avail // per_row if avail > 0 else 8
    return int(max(8, min(1024, (cap // 8) * 8)))


def _choose_tm(m_rows: int, tm_cap: int) -> int:
    """Row tile: >= 2 grid steps when possible (v7x megacore), capped by VMEM."""
    half = _round_up(_cdiv(m_rows, 2), 8)
    return int(max(8, min(tm_cap, half)))


# -----------------------------------------------------------------------------
# Kernel: one (tm, K) f32 activation tile against the VMEM-resident (K, N)
# bf16 weight.  The f32->bf16 cast happens here (VPU work hidden under DMA/MXU);
# accumulation, bias add and tanh stay in f32.
# -----------------------------------------------------------------------------
def _dense_tanh_kernel(x_ref, w_ref, b_ref, o_ref):
    x = x_ref[...].astype(w_ref.dtype)                       # in-kernel cast
    acc = jnp.dot(x, w_ref[...], preferred_element_type=jnp.float32)
    acc = acc + b_ref[...]                                    # (1, N) broadcast
    o_ref[...] = jnp.tanh(acc).astype(o_ref.dtype)


def _dense_tanh_2d(x2d, w_t, b_row, *, tm, vmem_limit):
    """x2d: (M, K) f32, w_t: (K, Np) bf16, b_row: (1, Np) f32 -> (M, Np)."""
    M, K = x2d.shape
    Kw, Np = w_t.shape
    assert K == Kw
    return pl.pallas_call(
        _dense_tanh_kernel,
        out_shape=jax.ShapeDtypeStruct((M, Np), x2d.dtype),
        grid_spec=pl.GridSpec(
            grid=(_cdiv(M, tm),),
            in_specs=[
                # streamed f32 activation rows (double-buffered by the pipeline)
                pl.BlockSpec((tm, K), lambda i: (i, 0)),
                # VMEM-resident weight / bias: constant index -> single buffer
                pl.BlockSpec((K, Np), lambda i: (0, 0),
                             pipeline_mode=pl.Buffered(1)),
                pl.BlockSpec((1, Np), lambda i: (0, 0),
                             pipeline_mode=pl.Buffered(1)),
            ],
            out_specs=pl.BlockSpec((tm, Np), lambda i: (i, 0)),
        ),
        compiler_params=pltpu.CompilerParams(
            dimension_semantics=("parallel",),   # shard M steps over v7x's 2 TCs
            vmem_limit_bytes=vmem_limit,
        ),
    )(x2d, w_t, b_row)


@functools.partial(jax.jit,
                   static_argnames=("out_features", "tm_cap", "vmem_limit"))
def _project_2d(x2d, w_t, b_row, *, out_features, tm_cap, vmem_limit):
    """tanh(x2d @ W^T + b) over a 2-D row-major slab.

    No wrapper-side cast, K-pad, M-pad or row slice; only a column slice when
    out_features is not a multiple of 128.
    """
    M, _ = x2d.shape
    Np = w_t.shape[1]
    tm = _choose_tm(M, tm_cap)
    y = _dense_tanh_2d(x2d, w_t, b_row, tm=tm, vmem_limit=vmem_limit)
    if Np != out_features:
        y = y[:, :out_features]
    return y


class DensePallas:
    """JAX/Pallas equivalent of zeronlg.models.Dense (tanh activation)."""

    def __init__(self, in_features, out_features, bias=True,
                 proj_token_embs=False, key=None,
                 compute_dtype=jnp.bfloat16):
        self.in_features = in_features
        self.out_features = out_features
        self.has_bias = bias
        self.proj_token_embs = proj_token_embs
        self.compute_dtype = compute_dtype
        if key is None:
            key = jax.random.PRNGKey(0)
        kw, kb = jax.random.split(key)
        # Deterministic init mimicking nn.Linear's uniform(-1/sqrt(in), 1/sqrt(in))
        bound = 1.0 / (in_features ** 0.5)
        # PyTorch layout (out_features, in_features)
        self.weight = jax.random.uniform(
            kw, (out_features, in_features), jnp.float32, -bound, bound)
        if bias:
            self.bias = jax.random.uniform(
                kb, (out_features,), jnp.float32, -bound, bound)
        else:
            self.bias = jnp.zeros((out_features,), jnp.float32)

        # Precompute kernel operands once: transpose to (in, out); pad ONLY the
        # out dim to a multiple of 128 (lane-dense, unmasked stores); weight in
        # the MXU-native compute dtype, bias in f32 for the epilogue.
        np_ = _round_up(out_features, 128)
        self.w_t = jnp.zeros((in_features, np_), compute_dtype).at[
            :, :out_features].set(self.weight.T.astype(compute_dtype))
        self.b_row = jnp.zeros((1, np_), jnp.float32).at[
            0, :out_features].set(self.bias.astype(jnp.float32))

        # Chip-aware VMEM budget and row-tile cap (static per module).
        self.vmem_limit = _vmem_limit_bytes()
        self.tm_cap = _row_tile_cap(in_features, np_, self.vmem_limit)

    def _project_nd(self, x):
        y2d = _project_2d(x.reshape(-1, self.in_features),
                          self.w_t, self.b_row,
                          out_features=self.out_features,
                          tm_cap=self.tm_cap,
                          vmem_limit=self.vmem_limit)
        return y2d.reshape(x.shape[:-1] + (self.out_features,))

    def __call__(self, features):
        features = dict(features)
        # Two independent pallas_calls (no HBM concat of the two slabs).
        features['sentence_embedding'] = self._project_nd(
            features['sentence_embedding'])
        if self.proj_token_embs and 'token_embeddings' in features:
            features['token_embeddings'] = self._project_nd(
                features['token_embeddings'])
        return features


def _reference(features, weight, bias, proj_token_embs, compute_dtype):
    """Pure-JAX reference using the same bf16 inputs / f32 accumulation."""
    w_t = weight.T.astype(compute_dtype)            # (in, out)
    b = bias.astype(jnp.float32)

    def proj(x):
        acc = jnp.dot(x.astype(compute_dtype), w_t,
                      preferred_element_type=jnp.float32)
        return jnp.tanh(acc + b).astype(x.dtype)

    out = dict(features)
    out['sentence_embedding'] = proj(features['sentence_embedding'])
    if proj_token_embs:
        out['token_embeddings'] = proj(features['token_embeddings'])
    return out


if __name__ == "__main__":
    key = jax.random.PRNGKey(0)
    k_sent, k_tok, k_params = jax.random.split(key, 3)

    batch, seq, in_features, out_features = 2, 8, 32, 32

    features = {
        'sentence_embedding': jax.random.normal(
            k_sent, (batch, in_features), jnp.float32),
        'token_embeddings': jax.random.normal(
            k_tok, (batch, seq, in_features), jnp.float32),
    }

    module = DensePallas(in_features, out_features, bias=True,
                         proj_token_embs=True, key=k_params)

    out = module(features)
    jax.block_until_ready(out['sentence_embedding'])
    jax.block_until_ready(out['token_embeddings'])

    # Correctness check against pure-JAX reference (same bf16 compute dtype).
    ref = _reference(features, module.weight, module.bias, True,
                     module.compute_dtype)
    assert out['sentence_embedding'].shape == (batch, out_features)
    assert out['token_embeddings'].shape == (batch, seq, out_features)
    assert out['sentence_embedding'].dtype == jnp.float32
    assert out['token_embeddings'].dtype == jnp.float32
    assert jnp.allclose(out['sentence_embedding'],
                        ref['sentence_embedding'], atol=1e-3, rtol=1e-3)
    assert jnp.allclose(out['token_embeddings'],
                        ref['token_embeddings'], atol=1e-3, rtol=1e-3)

    print("KERNEL_OK")
</pallas_src>

<mosaic_0001>
module attributes {stable_mosaic.version = 11 : i64} {
  func.func @_dense_tanh_kernel(%arg0: i32, %arg1: memref<8x32xf32, #tpu.memory_space<vmem>>, %arg2: memref<32x128xbf16, #tpu.memory_space<vmem>>, %arg3: memref<1x128xf32, #tpu.memory_space<vmem>>, %arg4: memref<8x128xf32, #tpu.memory_space<vmem>>) attributes {dimension_semantics = [#tpu.dimension_semantics<parallel>], iteration_bounds = array<i64: 1>, scalar_prefetch = 0 : i64, scratch_operands = 0 : i64, tpu.core_type = #tpu.core_type<tc>, window_params = [{transform_indices = @transform_0, window_bounds = array<i64: 8, 32>}, {pipeline_mode = #tpu.pipeline_mode<synchronous>, transform_indices = @transform_1, window_bounds = array<i64: 32, 128>}, {pipeline_mode = #tpu.pipeline_mode<synchronous>, transform_indices = @transform_2, window_bounds = array<i64: 1, 128>}, {transform_indices = @transform_3, window_bounds = array<i64: 8, 128>}]} {
    %c0 = arith.constant 0 : index
    %c0_0 = arith.constant 0 : index
    %0 = vector.load %arg1[%c0, %c0_0] : memref<8x32xf32, #tpu.memory_space<vmem>>, vector<8x32xf32>
    %1 = arith.truncf %0 : vector<8x32xf32> to vector<8x32xbf16>
    %c0_1 = arith.constant 0 : index
    %c0_2 = arith.constant 0 : index
    %2 = vector.load %arg2[%c0_1, %c0_2] : memref<32x128xbf16, #tpu.memory_space<vmem>>, vector<32x128xbf16>
    %cst = arith.constant dense<0.000000e+00> : vector<8x128xf32>
    %3 = tpu.matmul %1, %2, %cst {dimension_numbers = #tpu.dot_dimension_numbers<[1], [0], [0], [1], [0, 0, 1, 1], [], []>} : vector<8x32xbf16>, vector<32x128xbf16>, vector<8x128xf32> -> vector<8x128xf32>
    %c0_3 = arith.constant 0 : index
    %c0_4 = arith.constant 0 : index
    %4 = vector.load %arg3[%c0_3, %c0_4] : memref<1x128xf32, #tpu.memory_space<vmem>>, vector<1x128xf32>
    %5 = vector.broadcast %4 : vector<1x128xf32> to vector<8x128xf32>
    %6 = arith.addf %3, %5 : vector<8x128xf32>
    %7 = math.tanh %6 : vector<8x128xf32>
    %c0_5 = arith.constant 0 : index
    %c0_6 = arith.constant 0 : index
    %8 = vector.load %arg4[%c0_5, %c0_6] : memref<8x128xf32, #tpu.memory_space<vmem>>, vector<8x128xf32>
    tpu.vector_store %arg4[%c0_5, %c0_6], %7 {strides = array<i32>} : memref<8x128xf32, #tpu.memory_space<vmem>>, vector<8x128xf32>,
    return
  }
  func.func @transform_0(%arg0: i32) -> (i32, i32) {
    %c0_i32 = arith.constant 0 : i32
    %c0_i32_0 = arith.constant 0 : i32
    return %arg0, %c0_i32 : i32, i32
  }
  func.func @transform_1(%arg0: i32) -> (i32, i32) {
    %c0_i32 = arith.constant 0 : i32
    %c0_i32_0 = arith.constant 0 : i32
    %c0_i32_1 = arith.constant 0 : i32
    return %c0_i32, %c0_i32_0 : i32, i32
  }
  func.func @transform_2(%arg0: i32) -> (i32, i32) {
    %c0_i32 = arith.constant 0 : i32
    %c0_i32_0 = arith.constant 0 : i32
    %c0_i32_1 = arith.constant 0 : i32
    return %c0_i32, %c0_i32_0 : i32, i32
  }
  func.func @transform_3(%arg0: i32) -> (i32, i32) {
    %c0_i32 = arith.constant 0 : i32
    %c0_i32_0 = arith.constant 0 : i32
    return %arg0, %c0_i32 : i32, i32
  }
}

</mosaic_0001>

<bundles_post_ra>
// kernel: _project_2d.1
= control target key start
LH: loop header
LB: loop body
LE: loop exit
PB: predicated region body
PF: predicated region fallthrough
CT: control target
= control target key end

     0   :  { %8 = vsyncpa [#allocation3], 0  ;;  %s253_s0 = inlined_call_operand.hbm [shape: f32[2,32], index: 0, kind: input, shape index: {}]   ;;  %s254_s1 = inlined_call_operand.hbm [shape: bf16[32,128], index: 1, kind: input, shape index: {}]   ;;  %s255_s2 = inlined_call_operand.vmem [shape: f32[1,128], index: 2, kind: input, shape index: {}]   ;;  %s256_s3 = inlined_call_operand.hbm [shape: f32[2,128], index: 3, kind: output, shape index: {}]  }
   0x1   :  { %9 = vsyncpa [#allocation6], 0 }
   0x2   :  { %10 = vsyncpa [#allocation4], 0 }
   0x3   :  { %14 = vsyncadd [#allocation3], 96  ;;  %s15_s14 = sshll.u32 %s253_s0, 4  ;;  %s208_s15 = smov [#allocation2]   ;;  %s16_s14 = int_to_ptr.hbm [resolvable:$true] %s15_s14 }
   0x4   :  { %s17_s16 = sshll.u32 %s208_s15, 4  ;;  %s28_s19 = sshll.u32 %s254_s1, 4  ;;  %s18_s16 = int_to_ptr.vmem [resolvable:$true] %s17_s16  ;;  %s29_s19 = int_to_ptr.hbm [resolvable:$true] %s28_s19 }
   0x5   :  { %s209_s20 = smov 32   ;;  %s210_s21 = smov 2  }
   0x6   :  { %23 = dma.hbm_to_vmem [thread:$0]  %s16_s14, 32, %s18_s16, [#allocation3], %s209_s20, %s209_s20, %s210_s21  }
   0x7   :  { %s211_s22 = smov [#allocation5]   ;;  %s212_s24 = smov 64  }
   0x8   :  { %s30_s23 = sshll.u32 %s211_s22, 4  ;;  %s213_s0 = smov 4   ;;  %s31_s23 = int_to_ptr.vmem [resolvable:$true] %s30_s23 }
   0x9   :  { %36 = dma.hbm_to_vmem [thread:$0]  %s29_s19, 256, %s31_s23, [#allocation6], %s212_s24, %s212_s24, %s213_s0  }
   0xa   :  { %202 = dma.done.wait [#allocation3], 128  }
   0xb   :  { %203 = vsyncadd [#allocation3], 4294967168 }
   0xc   :  { %204 = dma.done.wait [#allocation6], 256  }
   0xd   :  { %205 = vsyncadd [#allocation6], 4294967040  ;;  %v119_v0 = vld [vmem:[#allocation5 + $0x8] sm:$0xff]  ;;  %v118_v1 = vld [vmem:[#allocation5] sm:$0xff]  ;;  %vm70_vm0 = vcmask 261120  }
   0xe   :  { %80 = vmatpush.bf16.msra.mxu0 %v119_v0  ;;  %v48_v2 = vld [vmem:[#allocation2] sm:$0xff] }
   0xf   :  { %v49_v3 = vpack.c.bf16 %v48_v2, %v48_v2  ;;  %v127_v4 = vld [vmem:[%s255_s2] ss:$0 sm:$0xff] }
  0x12   :  { %81 = vmatpush.bf16.msra.mxu0 %v118_v1 }
  0x15   :  { %117 = vmatmul.msk.bf16.vlgmr.msra.gmra.mxu0 %vm70_vm0, %v49_v3 }
  0x92   :  { %v83_v5 = vpop.f32.mrf.mxu0 }
  0x93   :  { %v84_v6 = vadd.f32 %v127_v4, %v83_v5 }
  0x95   :  { %128 = vtanh.f32 %v84_v6 }
  0x9a   :  { %v85_v7 = vpop.f32.mrf.mxu0 }
  0x9b   :  { %v129_v8 = vpop.eup %128 }
  0x9c   :  { %88 = vst [vmem:[#allocation7] sm:$0xff] %v129_v8 }
  0x9d   :  { %92 = vsyncadd [#allocation4], 96  ;;  %s95_s28 = sshll.u32 %s256_s3, 4  ;;  %s214_s29 = smov [#allocation7]   ;;  %s96_s28 = int_to_ptr.hbm [resolvable:$true] %s95_s28 }
  0x9e   :  { %s93_s30 = sshll.u32 %s214_s29, 4  ;;  %s94_s30 = int_to_ptr.vmem [resolvable:$true] %s93_s30 }
  0x9f   :  { %101 = dma.vmem_to_hbm [thread:$0]  %s94_s30, 32, %s96_s28, [#allocation4], %s209_s20, %s209_s20, %s210_s21  }
  0xa0   :  { %206 = dma.done.wait [#allocation4], 128  }
  0xa1   :  { %207 = vsyncadd [#allocation4], 4294967168 }
  0xa2   :  { %106 = vsyncpa [#allocation3], 1 }
  0xa3   :  { %107 = vsyncpa [#allocation6], 1 }
  0xa4   :  { %108 = vsyncpa [#allocation4], 1 }

</bundles_post_ra>
